<compile_context>
chip_gen: v6e
topology: v6e:2x2x1
jax: 0.10.0
libtpu: 0.0.40
codegen_flags: <defaults>
</compile_context>

<pallas_src>
import math
from functools import partial

import jax
import jax.numpy as jnp
from jax.experimental import pallas as pl
from jax.experimental.pallas import tpu as pltpu


# ---------------------------------------------------------------------------
# Tile-size helper: largest multiple of `align`, <= target, dividing `dim`;
# falls back to the full extent (always legal per the (8,128) block rule).
# ---------------------------------------------------------------------------
def _pick_tile(dim, target, align):
    t = (target // align) * align
    while t >= align:
        if t <= dim and dim % t == 0:
            return t
        t -= align
    return dim


# ---------------------------------------------------------------------------
# Kernel 1: tiled linear projection  y = x @ W^T + b
#   grid = (M/tm, N/tn, K/tk); f32 accumulator; bias added on last K step only.
# ---------------------------------------------------------------------------
def _linear_kernel(x_ref, w_ref, b_ref, o_ref, acc_ref):
    k = pl.program_id(2)

    @pl.when(k == 0)
    def _():
        acc_ref[...] = jnp.zeros_like(acc_ref)

    acc_ref[...] += jnp.dot(x_ref[...], w_ref[...],
                            preferred_element_type=jnp.float32)

    @pl.when(k == pl.num_programs(2) - 1)
    def _():
        o_ref[...] = (acc_ref[...] + b_ref[...].astype(jnp.float32)).astype(o_ref.dtype)


def linear(x, w, b, *, tm=None, tn=None, tk=None):
    """x: (M, K), w: (N, K) PyTorch layout, b: (N,) -> (M, N)."""
    m, kdim = x.shape
    n = w.shape[0]
    tm = tm if tm is not None else _pick_tile(m, 256, 8)
    tn = tn if tn is not None else _pick_tile(n, 256, 128)
    tk = tk if tk is not None else _pick_tile(kdim, 512, 128)
    assert m % tm == 0 and n % tn == 0 and kdim % tk == 0

    wT = w.T                       # (K, N), transposed once per call
    b2 = b.reshape(1, n)
    grid = (m // tm, n // tn, kdim // tk)

    return pl.pallas_call(
        _linear_kernel,
        out_shape=jax.ShapeDtypeStruct((m, n), x.dtype),
        grid=grid,
        in_specs=[
            pl.BlockSpec((tm, tk), lambda i, j, k: (i, k)),
            pl.BlockSpec((tk, tn), lambda i, j, k: (k, j)),
            pl.BlockSpec((1, tn), lambda i, j, k: (0, j)),
        ],
        out_specs=pl.BlockSpec((tm, tn), lambda i, j, k: (i, j)),
        scratch_shapes=[pltpu.VMEM((tm, tn), jnp.float32)],
        compiler_params=pltpu.CompilerParams(
            dimension_semantics=("parallel", "parallel", "arbitrary"),
            vmem_limit_bytes=32 * 1024 * 1024),
    )(x, wT, b2)


# ---------------------------------------------------------------------------
# Kernel 2: flash-attention core over grid (B*H, q_tiles, kv_tiles)
#   online softmax with m/l/acc scratch; causal block skipping; f32 numerics.
# ---------------------------------------------------------------------------
def _flash_attn_kernel(q_ref, k_ref, v_ref, o_ref, m_ref, l_ref, acc_ref,
                       *, causal, tq, tkv):
    qi = pl.program_id(1)
    ki = pl.program_id(2)
    nkv = pl.num_programs(2)

    @pl.when(ki == 0)
    def _():
        m_ref[...] = jnp.full_like(m_ref, -jnp.inf)
        l_ref[...] = jnp.zeros_like(l_ref)
        acc_ref[...] = jnp.zeros_like(acc_ref)

    if causal:
        q_end = (qi + 1) * tq - 1                      # last query row in this q block
        should_compute = ki * tkv <= q_end             # any unmasked element in block?
        kv_last = jnp.minimum(q_end // tkv, nkv - 1)   # last kv block this q block needs
    else:
        should_compute = None
        kv_last = nkv - 1

    def compute():
        q = q_ref[0]                                   # (tq, d)
        k = k_ref[0]                                   # (tkv, d)
        v = v_ref[0]                                   # (tkv, d)
        # q @ k^T without materializing a transpose (contract last dims).
        s = jax.lax.dot_general(q, k, (((1,), (1,)), ((), ())),
                                preferred_element_type=jnp.float32)  # (tq, tkv)
        if causal:
            row = jax.lax.broadcasted_iota(jnp.int32, s.shape, 0) + qi * tq
            col = jax.lax.broadcasted_iota(jnp.int32, s.shape, 1) + ki * tkv
            s = jnp.where(col <= row, s, -jnp.inf)

        m_prev = m_ref[...]
        m_new = jnp.maximum(m_prev, jnp.max(s, axis=-1, keepdims=True))
        alpha = jnp.exp(m_prev - m_new)
        p = jnp.exp(s - m_new)
        l_ref[...] = alpha * l_ref[...] + jnp.sum(p, axis=-1, keepdims=True)
        acc_ref[...] = alpha * acc_ref[...] + jnp.dot(
            p.astype(v.dtype), v, preferred_element_type=jnp.float32)
        m_ref[...] = m_new

    if causal:
        pl.when(should_compute)(compute)               # skip fully-masked kv blocks
    else:
        compute()

    @pl.when(ki == kv_last)
    def _():
        o_ref[0] = (acc_ref[...] *
                    pl.reciprocal(l_ref[...], approx=True)).astype(o_ref.dtype)


def attention_core(q, k, v, causal, *, block_q=None, block_kv=None):
    """q, k, v: (B*H, S, d_head) -> (B*H, S, d_head)."""
    bh, s, d = q.shape
    tq = block_q if block_q is not None else _pick_tile(s, 128, 8)
    tkv = block_kv if block_kv is not None else _pick_tile(s, 128, 8)
    assert s % tq == 0 and s % tkv == 0
    nq, nkv = s // tq, s // tkv

    flops = 4 * bh * s * s * d
    if causal:
        flops //= 2
    itemsize = jnp.dtype(q.dtype).itemsize
    cost = pl.CostEstimate(flops=int(flops),
                           transcendentals=int(bh * s * s),
                           bytes_accessed=int(4 * bh * s * d * itemsize))

    kern = partial(_flash_attn_kernel, causal=causal, tq=tq, tkv=tkv)
    # TODO(synk): group several heads per block (or keep (S,B,D) layout with
    # column-window BlockSpecs) to raise MXU occupancy when d_head < 128.
    return pl.pallas_call(
        kern,
        out_shape=jax.ShapeDtypeStruct((bh, s, d), q.dtype),
        grid=(bh, nq, nkv),
        in_specs=[
            pl.BlockSpec((1, tq, d), lambda b, qi, ki: (b, qi, 0)),
            pl.BlockSpec((1, tkv, d), lambda b, qi, ki: (b, ki, 0)),
            pl.BlockSpec((1, tkv, d), lambda b, qi, ki: (b, ki, 0)),
        ],
        out_specs=pl.BlockSpec((1, tq, d), lambda b, qi, ki: (b, qi, 0)),
        scratch_shapes=[
            pltpu.VMEM((tq, 1), jnp.float32),   # running max m
            pltpu.VMEM((tq, 1), jnp.float32),   # running denom l
            pltpu.VMEM((tq, d), jnp.float32),   # output accumulator
        ],
        compiler_params=pltpu.CompilerParams(
            dimension_semantics=("parallel", "parallel", "arbitrary"),
            vmem_limit_bytes=32 * 1024 * 1024),
        cost_estimate=cost,
    )(q, k, v)


# ---------------------------------------------------------------------------
# Full forward
# ---------------------------------------------------------------------------
def multihead_attention(x, params, n_heads, causal=False, *,
                        block_q=None, block_kv=None,
                        proj_tm=None, proj_tn=None, proj_tk=None,
                        compute_dtype=None):
    # x: (S, B, D) -- seq-first, matching batch_first=False
    S, B, D = x.shape
    d_head = D // n_heads
    assert d_head * n_heads == D

    out_dtype = x.dtype
    cdt = jnp.dtype(compute_dtype) if compute_dtype is not None else x.dtype

    # Fold the per-head scale 1/(sqrt(d_head)*exp(beta)) into the q projection.
    scale = 1.0 / (math.sqrt(d_head) * jnp.exp(params["beta"].astype(jnp.float32)))
    scale_vec = jnp.repeat(scale, d_head)                      # (D,)
    wq_s = params["wq"] * scale_vec[:, None]
    bq_s = params["bq"] * scale_vec

    # Fused QKV projection: single tiled matmul to (S*B, 3D), then slice.
    w_qkv = jnp.concatenate([wq_s, params["wk"], params["wv"]], axis=0)   # (3D, D)
    b_qkv = jnp.concatenate([bq_s, params["bk"], params["bv"]])           # (3D,)

    x2 = x.reshape(S * B, D).astype(cdt)
    qkv = linear(x2, w_qkv.astype(cdt), b_qkv.astype(cdt),
                 tm=proj_tm, tn=proj_tn, tk=proj_tk)                      # (S*B, 3D)
    q, k, v = qkv[:, :D], qkv[:, D:2 * D], qkv[:, 2 * D:]

    # 's b (h d) -> (b h) s d'
    # TODO(synk): these head-split transposes are HBM passes; removing them needs
    # column-window BlockSpecs which the (8,128) rule forbids for small d_head.
    def to_bh_s_d(t):
        t = t.reshape(S, B, n_heads, d_head)
        t = jnp.transpose(t, (1, 2, 0, 3))                     # (B, H, S, d)
        return t.reshape(B * n_heads, S, d_head)

    qh, kh, vh = to_bh_s_d(q), to_bh_s_d(k), to_bh_s_d(v)

    attn = attention_core(qh, kh, vh, causal, block_q=block_q, block_kv=block_kv)

    # '(b h) s d -> s b (h d)'
    attn = attn.reshape(B, n_heads, S, d_head)
    attn = jnp.transpose(attn, (2, 0, 1, 3)).reshape(S * B, D)

    out = linear(attn.astype(cdt), params["wo"].astype(cdt), params["bo"].astype(cdt),
                 tm=proj_tm, tn=proj_tn, tk=proj_tk)
    return out.reshape(S, B, D).astype(out_dtype)


# ---------------------------------------------------------------------------
# Pure-JAX reference for correctness checking
# ---------------------------------------------------------------------------
def reference_mha(x, params, n_heads, causal=False):
    S, B, D = x.shape
    d_head = D // n_heads
    x2 = x.reshape(S * B, D)
    q = x2 @ params["wq"].T + params["bq"]
    k = x2 @ params["wk"].T + params["bk"]
    v = x2 @ params["wv"].T + params["bv"]

    def split(t):
        return jnp.transpose(t.reshape(S, B, n_heads, d_head), (1, 2, 0, 3))

    qh, kh, vh = split(q), split(k), split(v)
    beta = jnp.exp(params["beta"]).reshape(1, n_heads, 1, 1)
    qh = qh / (math.sqrt(d_head) * beta)
    s = jnp.einsum("bhqd,bhkd->bhqk", qh, kh)
    if causal:
        mask = jnp.tril(jnp.ones((S, S), dtype=bool))
        s = jnp.where(mask[None, None], s, -jnp.inf)
    p = jax.nn.softmax(s, axis=-1)
    o = jnp.einsum("bhqk,bhkd->bhqd", p, vh)
    o = jnp.transpose(o, (2, 0, 1, 3)).reshape(S * B, D)
    o = o @ params["wo"].T + params["bo"]
    return o.reshape(S, B, D)


# ---------------------------------------------------------------------------
# Deterministic parameter init (matching _reset_parameters)
# ---------------------------------------------------------------------------
def init_params(key, d_model, n_heads):
    keys = jax.random.split(key, 8)
    limit = math.sqrt(6.0 / (d_model + d_model))      # xavier_uniform for square W

    def xavier(k):
        return jax.random.uniform(k, (d_model, d_model), jnp.float32, -limit, limit)

    bound = 1.0 / math.sqrt(d_model)                  # nn.Linear default bias init
    return {
        "beta": jnp.zeros((n_heads,), jnp.float32),   # constant_(beta, 0)
        "wq": xavier(keys[0]),
        "bq": jax.random.uniform(keys[1], (d_model,), jnp.float32, -bound, bound),
        "wk": xavier(keys[2]),
        "bk": jax.random.uniform(keys[3], (d_model,), jnp.float32, -bound, bound),
        "wv": xavier(keys[4]),
        "bv": jax.random.uniform(keys[5], (d_model,), jnp.float32, -bound, bound),
        "wo": xavier(keys[6]),
        "bo": jnp.zeros((d_model,), jnp.float32),     # constant_(out bias, 0)
    }


if __name__ == "__main__":
    key = jax.random.PRNGKey(0)
    k1, k2, k3, k4, k5 = jax.random.split(key, 5)

    # --- Test 1: small shapes (single attention block per head) ---
    seq, batch, d_model, n_heads = 8, 2, 32, 4
    x = jax.random.normal(k1, (seq, batch, d_model), dtype=jnp.float32)
    params = init_params(k2, d_model, n_heads)
    for causal in (True, False):
        out = jax.block_until_ready(multihead_attention(x, params, n_heads, causal=causal))
        ref = reference_mha(x, params, n_heads, causal=causal)
        assert out.shape == (seq, batch, d_model)
        assert jnp.allclose(out, ref, atol=5e-3, rtol=5e-3), f"mismatch causal={causal}"

    # --- Test 2: multi-block flash path (online softmax + causal block skip)
    #     and tiled projection with K-axis accumulation ---
    seq2, batch2, d_model2, n_heads2 = 32, 2, 256, 8
    x2 = jax.random.normal(k3, (seq2, batch2, d_model2), dtype=jnp.float32)
    params2 = init_params(k4, d_model2, n_heads2)
    params2["beta"] = 0.1 * jax.random.normal(k5, (n_heads2,), jnp.float32)
    out2 = jax.block_until_ready(
        multihead_attention(x2, params2, n_heads2, causal=True,
                            block_q=8, block_kv=8, proj_tk=128))
    ref2 = reference_mha(x2, params2, n_heads2, causal=True)
    assert out2.shape == (seq2, batch2, d_model2)
    assert jnp.allclose(out2, ref2, atol=5e-3, rtol=5e-3), "mismatch multi-block"

    print("KERNEL_OK")
</pallas_src>

<mosaic_0001>
module attributes {stable_mosaic.version = 11 : i64} {
  func.func @_linear_kernel(%arg0: i32, %arg1: i32, %arg2: i32, %arg3: memref<16x32xf32, #tpu.memory_space<vmem>>, %arg4: memref<32x96xf32, #tpu.memory_space<vmem>>, %arg5: memref<1x96xf32, #tpu.memory_space<vmem>>, %arg6: memref<16x96xf32, #tpu.memory_space<vmem>>, %arg7: memref<16x96xf32, #tpu.memory_space<vmem>>) attributes {dimension_semantics = [#tpu.dimension_semantics<parallel>, #tpu.dimension_semantics<parallel>, #tpu.dimension_semantics<arbitrary>], iteration_bounds = array<i64: 1, 1, 1>, scalar_prefetch = 0 : i64, scratch_operands = 1 : i64, tpu.core_type = #tpu.core_type<tc>, window_params = [{transform_indices = @transform_0, window_bounds = array<i64: 16, 32>}, {transform_indices = @transform_1, window_bounds = array<i64: 32, 96>}, {transform_indices = @transform_2, window_bounds = array<i64: 1, 96>}, {transform_indices = @transform_3, window_bounds = array<i64: 16, 96>}]} {
    %c0_i32 = arith.constant 0 : i32
    %0 = arith.cmpi eq, %arg2, %c0_i32 : i32
    %1 = arith.extui %0 : i1 to i32
    %c0_i32_0 = arith.constant 0 : i32
    %2 = arith.cmpi ne, %1, %c0_i32_0 : i32
    scf.if %2 {
      %cst_10 = arith.constant 0.000000e+00 : f32
      %12 = vector.broadcast %cst_10 : f32 to vector<16x96xf32>
      %c0_11 = arith.constant 0 : index
      %c0_12 = arith.constant 0 : index
      %13 = vector.load %arg7[%c0_11, %c0_12] : memref<16x96xf32, #tpu.memory_space<vmem>>, vector<16x96xf32>
      tpu.vector_store %arg7[%c0_11, %c0_12], %12 {strides = array<i32>} : memref<16x96xf32, #tpu.memory_space<vmem>>, vector<16x96xf32>,
    } else {
    }
    %c0 = arith.constant 0 : index
    %c0_1 = arith.constant 0 : index
    %3 = vector.load %arg7[%c0, %c0_1] : memref<16x96xf32, #tpu.memory_space<vmem>>, vector<16x96xf32>
    %c0_2 = arith.constant 0 : index
    %c0_3 = arith.constant 0 : index
    %4 = vector.load %arg3[%c0_2, %c0_3] : memref<16x32xf32, #tpu.memory_space<vmem>>, vector<16x32xf32>
    %c0_4 = arith.constant 0 : index
    %c0_5 = arith.constant 0 : index
    %5 = vector.load %arg4[%c0_4, %c0_5] : memref<32x96xf32, #tpu.memory_space<vmem>>, vector<32x96xf32>
    %cst = arith.constant dense<0.000000e+00> : vector<16x96xf32>
    %6 = tpu.matmul %4, %5, %cst {dimension_numbers = #tpu.dot_dimension_numbers<[1], [0], [0], [1], [0, 0, 1, 1], [], []>} : vector<16x32xf32>, vector<32x96xf32>, vector<16x96xf32> -> vector<16x96xf32>
    %7 = arith.addf %3, %6 : vector<16x96xf32>
    %c0_6 = arith.constant 0 : index
    %c0_7 = arith.constant 0 : index
    %8 = vector.load %arg7[%c0_6, %c0_7] : memref<16x96xf32, #tpu.memory_space<vmem>>, vector<16x96xf32>
    tpu.vector_store %arg7[%c0_6, %c0_7], %7 {strides = array<i32>} : memref<16x96xf32, #tpu.memory_space<vmem>>, vector<16x96xf32>,
    %c0_i32_8 = arith.constant 0 : i32
    %9 = arith.cmpi eq, %arg2, %c0_i32_8 : i32
    %10 = arith.extui %9 : i1 to i32
    %c0_i32_9 = arith.constant 0 : i32
    %11 = arith.cmpi ne, %10, %c0_i32_9 : i32
    scf.if %11 {
      %c0_10 = arith.constant 0 : index
      %c0_11 = arith.constant 0 : index
      %12 = vector.load %arg7[%c0_10, %c0_11] : memref<16x96xf32, #tpu.memory_space<vmem>>, vector<16x96xf32>
      %c0_12 = arith.constant 0 : index
      %c0_13 = arith.constant 0 : index
      %13 = vector.load %arg5[%c0_12, %c0_13] : memref<1x96xf32, #tpu.memory_space<vmem>>, vector<1x96xf32>
      %14 = vector.broadcast %13 : vector<1x96xf32> to vector<16x96xf32>
      %15 = arith.addf %12, %14 : vector<16x96xf32>
      %c0_14 = arith.constant 0 : index
      %c0_15 = arith.constant 0 : index
      %16 = vector.load %arg6[%c0_14, %c0_15] : memref<16x96xf32, #tpu.memory_space<vmem>>, vector<16x96xf32>
      tpu.vector_store %arg6[%c0_14, %c0_15], %15 {strides = array<i32>} : memref<16x96xf32, #tpu.memory_space<vmem>>, vector<16x96xf32>,
    } else {
    }
    return
  }
  func.func @transform_0(%arg0: i32, %arg1: i32, %arg2: i32) -> (i32, i32) {
    %c0_i32 = arith.constant 0 : i32
    return %arg0, %arg2 : i32, i32
  }
  func.func @transform_1(%arg0: i32, %arg1: i32, %arg2: i32) -> (i32, i32) {
    %c0_i32 = arith.constant 0 : i32
    return %arg2, %arg1 : i32, i32
  }
  func.func @transform_2(%arg0: i32, %arg1: i32, %arg2: i32) -> (i32, i32) {
    %c0_i32 = arith.constant 0 : i32
    %c0_i32_0 = arith.constant 0 : i32
    return %c0_i32, %arg1 : i32, i32
  }
  func.func @transform_3(%arg0: i32, %arg1: i32, %arg2: i32) -> (i32, i32) {
    %c0_i32 = arith.constant 0 : i32
    return %arg0, %arg1 : i32, i32
  }
}

</mosaic_0001>

<bundles_post_ra>
// kernel: tpu_custom_call.1
= control target key start
LH: loop header
LB: loop body
LE: loop exit
PB: predicated region body
PF: predicated region fallthrough
CT: control target
= control target key end

     0   :  { %8 = vsyncpa [#allocation4], 0  ;;  %s326_s0 = inlined_call_operand.hbm [shape: f32[16,32], index: 0, kind: input, shape index: {}]   ;;  %s327_s1 = inlined_call_operand.hbm [shape: f32[32,96], index: 1, kind: input, shape index: {}]   ;;  %s328_s2 = inlined_call_operand.vmem [shape: f32[1,96], index: 2, kind: input, shape index: {}]   ;;  %s329_s3 = inlined_call_operand.hbm [shape: f32[16,96], index: 3, kind: output, shape index: {}]  }
   0x1   :  { %9 = vsyncpa [#allocation7], 0 }
   0x2   :  { %10 = vsyncpa [#allocation5], 0  ;;  %s271_s12 = smov [#allocation3]  }
   0x3   :  { %s16_s13 = sshll.u32 %s271_s12, 4  ;;  %s17_s13 = int_to_ptr.vmem [resolvable:$true] %s16_s13 }
   0x4   :  { %s213_s14 = scalar_lea.vmem %s17_s13, 256  ;;  %p218_p1 = scmp.lt.s32.totalorder %s17_s13, %s17_s13 }
   0x5   :  { %p214_p0 = scmp.ne.s32.totalorder %s17_s13, %s213_s14  ;;  %p219_p2 = scmp.lt.s32.totalorder %s213_s14, %s213_s14 }
   0x7   :  { %p220_p3 = por %p219_p2, %p218_p1 }
   0x9   :  { %p221_p4 = pnand %p220_p3, %p214_p0 }
   0xb   :  { %224 = shalt.err (!%p221_p4)
}
   0xc   :  { %s272_s15 = smov 128   ;;  %s273_s16 = smov 8  }
   0xd   :  { %22 = dma.hbm_to_vmem [thread:$0]  %s326_s0, 256, %s17_s13, [#allocation4], %s272_s15, %s272_s15, %s273_s16  }
   0xe   :  { %s274_s19 = smov [#allocation6]  }
   0xf   :  { %s28_s20 = sshll.u32 %s274_s19, 4  ;;  %s29_s20 = int_to_ptr.vmem [resolvable:$true] %s28_s20 }
  0x10   :  { %s233_s21 = scalar_lea.vmem %s29_s20, 512  ;;  %p238_p6 = scmp.lt.s32.totalorder %s29_s20, %s29_s20 }
  0x11   :  { %p234_p5 = scmp.ne.s32.totalorder %s29_s20, %s233_s21  ;;  %p239_p7 = scmp.lt.s32.totalorder %s233_s21, %s233_s21 }
  0x13   :  { %p240_p8 = por %p239_p7, %p238_p6 }
  0x15   :  { %p241_p9 = pnand %p240_p8, %p234_p5 }
  0x17   :  { %244 = shalt.err (!%p241_p9)
}
  0x18   :  { %34 = dma.hbm_to_vmem [thread:$0]  %s327_s1, 512, %s29_s20, [#allocation7], %s272_s15, %s272_s15, %s273_s16  }
  0x19   :  { %265 = dma.done.wait [#allocation4], 256  }
  0x1a   :  { %266 = vsyncadd [#allocation4], 4294967040 }
  0x1b   :  { %267 = dma.done.wait [#allocation7], 512  }
  0x1c   :  { %268 = vsyncadd [#allocation7], 4294966784  ;;  %vm47_vm0 = vcmask 785408   ;;  %v275_v0 = vmov 0.0   ;;  %vm58_vm1 = vcmask 261120   ;;  %v57_v1 = vld [vmem:[#allocation6 + $0x18] sm:$0xff] }
  0x1d   :  { %49 = vst.msk [vmem:[#allocation2 + $0x8] sm:$0xff] %vm47_vm0, %v275_v0  ;;  %48 = vst.msk [vmem:[#allocation2] sm:$0xff] %vm47_vm0, %v275_v0  ;;  %v56_v2 = vld [vmem:[#allocation6 + $0x10] sm:$0xff]  ;;  %188 = vmatprep.subr.mxu0 %v57_v1  ;;  %v55_v4 = vld [vmem:[#allocation6 + $0x8] sm:$0xff]  ;;  %s276_s24 = smov [#allocation8]  }
  0x1e   :  { %v52_v3 = vld [vmem:[#allocation3] sm:$0xff]  ;;  %189 = vmatpush3.msra.mxu0 %v57_v1  ;;  %v54_v5 = vld [vmem:[#allocation6] sm:$0xff]  ;;  %v53_v6 = vld [vmem:[#allocation3 + $0x8] sm:$0xff]  ;;  %s166_s25 = sshll.u32 %s276_s24, 4  ;;  %s167_s25 = int_to_ptr.vmem [resolvable:$true] %s166_s25 }
  0x1f   :  { %196 = vmatprep.mubr.msk.f32.mxu0 %vm58_vm1, %v52_v3  ;;  %190 = vmatprep.subr.mxu0 %v56_v2  ;;  %v181_v13 = vld [vmem:[%s328_s2] ss:$0 sm:$0xff]  ;;  %s245_s26 = scalar_lea.vmem %s167_s25, 256  ;;  %p250_p11 = scmp.lt.s32.totalorder %s167_s25, %s167_s25 }
  0x20   :  { %191 = vmatpush3.msra.mxu0 %v56_v2  ;;  %p246_p10 = scmp.ne.s32.totalorder %s167_s25, %s245_s26  ;;  %p251_p12 = scmp.lt.s32.totalorder %s245_s26, %s245_s26 }
  0x21   :  { %192 = vmatprep.subr.mxu0 %v55_v4 }
  0x22   :  { %193 = vmatpush3.msra.mxu0 %v55_v4  ;;  %p252_p13 = por %p251_p12, %p250_p11 }
  0x23   :  { %194 = vmatprep.subr.mxu0 %v54_v5 }
  0x24   :  { %195 = vmatpush3.msra.mxu0 %v54_v5  ;;  %v51_v7 = vld [vmem:[#allocation2 + $0x8] sm:$0xff]  ;;  %v50_v9 = vld [vmem:[#allocation2] sm:$0xff]  ;;  %p253_p0 = pnand %p252_p13, %p246_p10 }
  0x25   :  { %197 = vmatmul.mubr.msk.f32.vlgmr.msra.gmra.mxu0 %vm58_vm1, %v53_v6 }
  0xe5   :  { %v198_v8 = vpop.f32.mrf.mxu0 }
  0xe6   :  { %v141_v10 = vadd.f32 %v198_v8, %v51_v7 }
  0xe7   :  { %v131_v11 = vpop.f32.mrf.mxu0 }
  0xe8   :  { %144 = vst.msk [vmem:[#allocation2 + $0x8] sm:$0xff] %vm47_vm0, %v141_v10  ;;  %v140_v12 = vadd.f32 %v131_v11, %v50_v9 }
  0xea   :  { %143 = vst.msk [vmem:[#allocation2] sm:$0xff] %vm47_vm0, %v140_v12 }
  0xef   :  { %v149_v14 = vld [vmem:[#allocation2 + $0x8] sm:$0xff] }
  0xf0   :  { %v158_v15 = vadd.f32 %v181_v13, %v149_v14 }
  0xf1   :  { %v148_v16 = vld [vmem:[#allocation2] sm:$0xff] }
  0xf2   :  { %v157_v17 = vadd.f32 %v181_v13, %v148_v16  ;;  %160 = vst.msk [vmem:[#allocation8 + $0x8] sm:$0xff] %vm47_vm0, %v158_v15 }
  0xf4   :  { %159 = vst.msk [vmem:[#allocation8] sm:$0xff] %vm47_vm0, %v157_v17 }
  0xf5   :  { %256 = shalt.err (!%p253_p0)
}
  0xf6   :  { %172 = dma.vmem_to_hbm [thread:$0]  %s167_s25, 256, %s329_s3, [#allocation5], %s272_s15, %s272_s15, %s273_s16  }
  0xf7   :  { %269 = dma.done.wait [#allocation5], 256  }
  0xf8   :  { %270 = vsyncadd [#allocation5], 4294967040 }
  0xf9   :  { %176 = vsyncpa [#allocation4], 1 }
  0xfa   :  { %177 = vsyncpa [#allocation7], 1 }
  0xfb   :  { %178 = vsyncpa [#allocation5], 1 }

</bundles_post_ra>
